<compile_context>
chip_gen: v5e
topology: v5e:2x2
jax: 0.10.0
libtpu: 0.0.40
codegen_flags: <defaults>
</compile_context>

<pallas_src>
from functools import partial

import numpy as np
import jax
import jax.numpy as jnp
from jax.experimental import pallas as pl
from jax.experimental.pallas import tpu as pltpu


_VMEM_LIMIT_BYTES = 32 * 1024 * 1024   # requested scoped VMEM (safe on v5e/v6e/v7x)
_VMEM_BUDGET_BYTES = 26 * 1024 * 1024  # tile-footprint budget (headroom for scratch)


def _pool_kernel(x_ref, p_ref, o_ref):
    # x_ref: (TR, L)   p_ref: (L, N_pad)   o_ref: (TR, N_pad)
    o_ref[...] = jnp.dot(
        x_ref[...], p_ref[...], preferred_element_type=jnp.float32
    ).astype(o_ref.dtype)


def _round_up(v, m):
    return ((v + m - 1) // m) * m


def _choose_row_tile(rows, l, n_pad, itemsize):
    """Largest row tile (multiple of 8, <=512) whose per-step VMEM footprint
    fits the budget; keep >=2 grid steps when rows allow it (v7x 2-TC sharding
    + pipeline overlap)."""
    best = 8
    for tr in range(8, 513, 8):
        # double-buffered x/out tiles; P counted twice conservatively.
        need = itemsize * (2 * tr * l + 2 * tr * n_pad + 2 * l * n_pad)
        if need <= _VMEM_BUDGET_BYTES:
            best = tr
        else:
            break
    tr = best
    if rows > 8:
        tr = min(tr, _round_up((rows + 1) // 2, 8))  # >= 2 grid iterations
    return max(8, min(tr, _round_up(rows, 8)))


def _pool_matrix(l, k, s, pad_left, n_pad):
    """(L, N_pad) f32 matrix folding ReflectionPad1d((pad_left, 0)) + AvgPool1d(k, s).

    P[j, o] = (#direct hits of index j in window o + #reflected hits) / k,
    where reflected padded position p (< pad_left) maps to original index
    pad_left - p (PyTorch ReflectionPad1d semantics).
    """
    l_out = (l + pad_left - k) // s + 1
    j = np.arange(l)[:, None]          # original index
    o = np.arange(l_out)[None, :]      # output window
    lo = o * s
    hi = o * s + k
    direct = (j + pad_left >= lo) & (j + pad_left < hi)
    refl = (j >= 1) & (j <= pad_left) & (pad_left - j >= lo) & (pad_left - j < hi)
    p = (direct.astype(np.float32) + refl.astype(np.float32)) / float(k)
    p_full = np.zeros((l, n_pad), dtype=np.float32)
    p_full[:, :l_out] = p
    return p_full, l_out


@partial(jax.jit, static_argnames=("kernel_size", "reduct_rate"))
def ch_overlap_avg(x, kernel_size=32, reduct_rate=16):
    """x: (B, C, L).  Returns (B, C, L_out)."""
    b, c, l = x.shape
    K, S = kernel_size, reduct_rate

    if l < K:
        # TODO(synk): the PyTorch branch `F.avg_pool1d(l)(x)` misuses the
        # functional API and is not a valid call; no faithful equivalent.
        raise NotImplementedError("l < kernel_size branch is ill-defined in the reference")

    pad_left = K // 2 if K > S else 0
    l_out_raw = (l + pad_left - K) // S + 1
    n_pad = _round_up(max(l_out_raw, 1), 128)  # lane-dense output width
    p_np, l_out = _pool_matrix(l, K, S, pad_left, n_pad)
    pool_mat = jnp.asarray(p_np, dtype=x.dtype)  # bf16 inputs use bf16 MXU path

    rows = b * c
    x_rows = x.reshape(rows, l)  # free reshape; no extra HBM copy

    TR = _choose_row_tile(rows, l, n_pad, jnp.dtype(x.dtype).itemsize)
    grid = (pl.cdiv(rows, TR),)  # ragged tail block allowed (OOB writes masked)

    out_rows = pl.pallas_call(
        _pool_kernel,
        out_shape=jax.ShapeDtypeStruct((rows, n_pad), x.dtype),
        grid_spec=pltpu.PrefetchScalarGridSpec(
            num_scalar_prefetch=0,
            grid=grid,
            in_specs=[
                pl.BlockSpec((TR, l), lambda i: (i, 0)),
                # Constant block index -> P is DMA'd once and stays resident.
                pl.BlockSpec((l, n_pad), lambda i: (0, 0)),
            ],
            out_specs=pl.BlockSpec((TR, n_pad), lambda i: (i, 0)),
        ),
        compiler_params=pltpu.CompilerParams(
            dimension_semantics=("parallel",),
            vmem_limit_bytes=_VMEM_LIMIT_BYTES,
        ),
    )(x_rows, pool_mat)

    return out_rows[:, :l_out].reshape(b, c, l_out)


def _reference(x, kernel_size=32, reduct_rate=16):
    """Pure-JAX reference of the same PyTorch forward (for validation)."""
    K, S = kernel_size, reduct_rate
    pad_left = K // 2 if K > S else 0
    if pad_left:
        left = jnp.flip(x[:, :, 1:pad_left + 1], axis=-1)
        xp = jnp.concatenate([left, x], axis=-1)
    else:
        xp = x
    l_pad = xp.shape[-1]
    l_out = (l_pad - K) // S + 1
    outs = [jnp.mean(xp[:, :, o * S:o * S + K], axis=-1) for o in range(l_out)]
    return jnp.stack(outs, axis=-1)


if __name__ == "__main__":
    key = jax.random.PRNGKey(0)
    B, C, L = 2, 4, 64  # L >= kernel_size so the default (K > S) path is taken
    x = jax.random.normal(key, (B, C, L), dtype=jnp.float32)

    out = ch_overlap_avg(x, kernel_size=32, reduct_rate=16)
    out = jax.block_until_ready(out)
    ref = _reference(x, kernel_size=32, reduct_rate=16)
    assert out.shape == (B, C, 4), out.shape
    assert jnp.allclose(out, ref, atol=1e-5, rtol=1e-5), float(jnp.max(jnp.abs(out - ref)))

    # K <= S branch (no reflection pad) with a ragged row count (B*C = 15).
    x2 = jax.random.normal(jax.random.PRNGKey(1), (3, 5, 64), dtype=jnp.float32)
    out2 = jax.block_until_ready(ch_overlap_avg(x2, kernel_size=16, reduct_rate=16))
    ref2 = _reference(x2, kernel_size=16, reduct_rate=16)
    assert out2.shape == ref2.shape, (out2.shape, ref2.shape)
    assert jnp.allclose(out2, ref2, atol=1e-5, rtol=1e-5), float(jnp.max(jnp.abs(out2 - ref2)))

    print("KERNEL_OK")
</pallas_src>

<mosaic_0001>
module attributes {stable_mosaic.version = 11 : i64} {
  func.func @_pool_kernel(%arg0: i32, %arg1: memref<8x64xf32, #tpu.memory_space<vmem>>, %arg2: memref<64x128xf32, #tpu.memory_space<vmem>>, %arg3: memref<8x128xf32, #tpu.memory_space<vmem>>) attributes {dimension_semantics = [#tpu.dimension_semantics<parallel>], iteration_bounds = array<i64: 1>, scalar_prefetch = 0 : i64, scratch_operands = 0 : i64, tpu.core_type = #tpu.core_type<tc>, window_params = [{transform_indices = @transform_0, window_bounds = array<i64: 8, 64>}, {pipeline_mode = #tpu.pipeline_mode<synchronous>, transform_indices = @transform_1, window_bounds = array<i64: 64, 128>}, {transform_indices = @transform_2, window_bounds = array<i64: 8, 128>}]} {
    %c0 = arith.constant 0 : index
    %c0_0 = arith.constant 0 : index
    %0 = vector.load %arg1[%c0, %c0_0] : memref<8x64xf32, #tpu.memory_space<vmem>>, vector<8x64xf32>
    %c0_1 = arith.constant 0 : index
    %c0_2 = arith.constant 0 : index
    %1 = vector.load %arg2[%c0_1, %c0_2] : memref<64x128xf32, #tpu.memory_space<vmem>>, vector<64x128xf32>
    %cst = arith.constant dense<0.000000e+00> : vector<8x128xf32>
    %2 = tpu.matmul %0, %1, %cst {dimension_numbers = #tpu.dot_dimension_numbers<[1], [0], [0], [1], [0, 0, 1, 1], [], []>} : vector<8x64xf32>, vector<64x128xf32>, vector<8x128xf32> -> vector<8x128xf32>
    %c0_3 = arith.constant 0 : index
    %c0_4 = arith.constant 0 : index
    %3 = vector.load %arg3[%c0_3, %c0_4] : memref<8x128xf32, #tpu.memory_space<vmem>>, vector<8x128xf32>
    tpu.vector_store %arg3[%c0_3, %c0_4], %2 {strides = array<i32>} : memref<8x128xf32, #tpu.memory_space<vmem>>, vector<8x128xf32>,
    return
  }
  func.func @transform_0(%arg0: i32) -> (i32, i32) {
    %c0_i32 = arith.constant 0 : i32
    %c0_i32_0 = arith.constant 0 : i32
    return %arg0, %c0_i32 : i32, i32
  }
  func.func @transform_1(%arg0: i32) -> (i32, i32) {
    %c0_i32 = arith.constant 0 : i32
    %c0_i32_0 = arith.constant 0 : i32
    %c0_i32_1 = arith.constant 0 : i32
    return %c0_i32, %c0_i32_0 : i32, i32
  }
  func.func @transform_2(%arg0: i32) -> (i32, i32) {
    %c0_i32 = arith.constant 0 : i32
    %c0_i32_0 = arith.constant 0 : i32
    return %arg0, %c0_i32 : i32, i32
  }
}

</mosaic_0001>

<bundles_post_ra>
// kernel: ch_overlap_avg.1
= control target key start
LH: loop header
LB: loop body
LE: loop exit
PB: predicated region body
PF: predicated region fallthrough
CT: control target
= control target key end

     0   :  { %7 = vsyncpa [#allocation3], 0  ;;  %s207_s0 = inlined_call_operand.hbm [shape: f32[8,64], index: 0, kind: input, shape index: {}]   ;;  %s208_s1 = inlined_call_operand.hbm [shape: f32[64,128], index: 1, kind: input, shape index: {}]   ;;  %s209_s2 = inlined_call_operand.hbm [shape: f32[8,128], index: 2, kind: output, shape index: {}]  }
   0x1   :  { %8 = vsyncpa [#allocation6], 0 }
   0x2   :  { %9 = vsyncpa [#allocation4], 0  ;;  %s15_s11 = sshll.u32 %s207_s0, 4  ;;  %s178_s12 = smov [#allocation2]   ;;  %s16_s11 = int_to_ptr.hbm [resolvable:$true] %s15_s11 }
   0x3   :  { %s17_s13 = sshll.u32 %s178_s12, 4  ;;  %s25_s16 = sshll.u32 %s208_s1, 4  ;;  %s18_s13 = int_to_ptr.vmem [resolvable:$true] %s17_s13  ;;  %s26_s16 = int_to_ptr.hbm [resolvable:$true] %s25_s16 }
   0x4   :  { %20 = dma.hbm_to_vmem [thread:$0]  %s16_s11, 128, %s18_s13, [#allocation3]  }
   0x5   :  { %s179_s17 = smov [#allocation5]   ;;  %s180_s19 = smov 128  }
   0x6   :  { %s27_s18 = sshll.u32 %s179_s17, 4  ;;  %s181_s20 = smov 8   ;;  %s28_s18 = int_to_ptr.vmem [resolvable:$true] %s27_s18 }
   0x7   :  { %33 = dma.hbm_to_vmem [thread:$0]  %s26_s16, 1024, %s28_s18, [#allocation6], %s180_s19, %s180_s19, %s181_s20  }
   0x8   :  { %172 = dma.done.wait [#allocation3], 128  }
   0x9   :  { %173 = vsyncadd [#allocation3], 4294967168 }
   0xa   :  { %174 = dma.done.wait [#allocation6], 1024  }
   0xb   :  { %175 = vsyncadd [#allocation6], 4294966272  ;;  %v50_v0 = vld [vmem:[#allocation5 + $0x38] sm:$0xff]  ;;  %v49_v1 = vld [vmem:[#allocation5 + $0x30] sm:$0xff]  ;;  %vm51_vm0 = vcmask 523264   ;;  %s182_s0 = smov [#allocation7]  }
   0xc   :  { %63 = vmatpush.msra.mxu0 %v50_v0  ;;  %v48_v2 = vld [vmem:[#allocation5 + $0x28] sm:$0xff]  ;;  %v47_v3 = vld [vmem:[#allocation5 + $0x20] sm:$0xff]  ;;  %v46_v4 = vld [vmem:[#allocation5 + $0x18] sm:$0xff]  ;;  %s81_s1 = sshll.u32 %s182_s0, 4  ;;  %s83_s23 = sshll.u32 %s209_s2, 4  ;;  %s82_s1 = int_to_ptr.vmem [resolvable:$true] %s81_s1  ;;  %s84_s23 = int_to_ptr.hbm [resolvable:$true] %s83_s23 }
   0xd   :  { %v45_v5 = vld [vmem:[#allocation5 + $0x10] sm:$0xff]  ;;  %v44_v6 = vld [vmem:[#allocation5 + $0x8] sm:$0xff]  ;;  %v43_v7 = vld [vmem:[#allocation5] sm:$0xff] }
   0xe   :  { %64 = vmatpush.msra.mxu0 %v49_v1  ;;  %v42_v8 = vld [vmem:[#allocation2] sm:$0xff] }
  0x10   :  { %65 = vmatpush.msra.mxu0 %v48_v2 }
  0x12   :  { %66 = vmatpush.msra.mxu0 %v47_v3 }
  0x14   :  { %67 = vmatpush.msra.mxu0 %v46_v4 }
  0x16   :  { %68 = vmatpush.msra.mxu0 %v45_v5 }
  0x18   :  { %69 = vmatpush.msra.mxu0 %v44_v6 }
  0x1a   :  { %70 = vmatpush.msra.mxu0 %v43_v7 }
  0x1b   :  { %94 = vmatmul.msk.f32.vlgmr.msra.gmra.mxu0 %vm51_vm0, %v42_v8 }
  0x98   :  { %v72_v9 = vpop.f32.mrf.mxu0 }
  0x99   :  { %75 = vst [vmem:[#allocation7] sm:$0xff] %v72_v9 }
  0x9a   :  { %86 = dma.vmem_to_hbm [thread:$0]  %s82_s1, 128, %s84_s23, [#allocation4]  }
  0x9b   :  { %176 = dma.done.wait [#allocation4], 128  }
  0x9c   :  { %177 = vsyncadd [#allocation4], 4294967168 }
  0x9d   :  { %91 = vsyncpa [#allocation3], 1 }
  0x9e   :  { %92 = vsyncpa [#allocation6], 1 }
  0x9f   :  { %93 = vsyncpa [#allocation4], 1 }

</bundles_post_ra>
